<compile_context>
chip_gen: v6e
topology: v6e:2x2x1
jax: 0.10.0
libtpu: 0.0.40
codegen_flags: <defaults>
</compile_context>

<pallas_src>
import functools

import jax
import jax.numpy as jnp
from jax import lax
from jax.experimental import pallas as pl
from jax.experimental.pallas import tpu as pltpu

_LANE = 128                        # TPU lane width; batch tile is a multiple of this.
_MAX_TILE_BYTES = 4 * 1024 * 1024  # 4 MiB x tile -> 8 MiB double-buffered (fits v5e scoped VMEM).


def _round_up(x, m):
    return (x + m - 1) // m * m


def _classifier_kernel(x_ref, w_ref, b_ref, o_ref):
    # x_ref: [block_b, D]  x tile in its native [B, D] layout (contiguous DMA)
    # w_ref: [1, D]        PyTorch nn.Linear weight layout, f32, resident in VMEM
    # b_ref: [1, 1]        f32, resident
    # o_ref: [1, block_b]  lane-dense output slab (batch on lanes)
    x = x_ref[...].astype(jnp.float32)
    # Contract over D with batch landing on the lane axis: result is [1, block_b].
    logits = lax.dot_general(
        w_ref[...], x,
        dimension_numbers=(((1,), (1,)), ((), ())),
        preferred_element_type=jnp.float32,
    )
    logits = logits + b_ref[...]                             # broadcast bias
    o_ref[...] = jax.nn.sigmoid(logits).astype(o_ref.dtype)  # exp on EUP


@functools.partial(jax.jit, static_argnames=("block_b",))
def feature_classifier_forward(x, w, b, *, block_b=32768):
    """sigmoid(x @ w.T + b) for x: [B, D], w: [1, D] (PyTorch layout), b: [1]/[1,1].

    Returns [B, 1] in x.dtype.
    """
    B, D = x.shape
    itemsize = jnp.dtype(x.dtype).itemsize

    # Tile selection: as large as possible (amortizes ~0.35 us / grid-step
    # overhead), capped so the double-buffered x tile fits the smallest default
    # scoped VMEM (v5e 16 MiB), and shrunk for small batches.
    vmem_cap_rows = max(_LANE, (_MAX_TILE_BYTES // max(D * itemsize, 1)) // _LANE * _LANE)
    block_b = max(_LANE, min(block_b, vmem_cap_rows, _round_up(B, _LANE)))
    assert block_b % _LANE == 0, "block_b must be a multiple of 128 lanes"

    grid = (pl.cdiv(B, block_b),)  # no explicit padding: Pallas masks the partial last block

    w2 = jnp.reshape(w, (1, D)).astype(jnp.float32)  # keep weights in f32
    b2 = jnp.reshape(b, (1, 1)).astype(jnp.float32)

    cost = pl.CostEstimate(
        flops=2 * B * D,
        transcendentals=B,
        bytes_accessed=B * D * itemsize + B * itemsize + (D + 1) * 4,
    )

    yT = pl.pallas_call(
        _classifier_kernel,
        out_shape=jax.ShapeDtypeStruct((1, B), x.dtype),
        grid_spec=pl.GridSpec(
            grid=grid,
            in_specs=[
                pl.BlockSpec((block_b, D), lambda i: (i, 0)),  # x tile, native layout (pipelined)
                pl.BlockSpec((1, D), lambda i: (0, 0)),        # W (resident)
                pl.BlockSpec((1, 1), lambda i: (0, 0)),        # b (resident)
            ],
            out_specs=pl.BlockSpec((1, block_b), lambda i: (0, i)),
        ),
        compiler_params=pltpu.CompilerParams(
            dimension_semantics=("parallel",),                 # v7x: shard batch tiles over 2 TCs
        ),
        cost_estimate=cost,
    )(x, w2, b2)

    return jnp.reshape(yT, (B, 1))                             # [B, 1]


def init_params(key, input_dim):
    """Deterministic PyTorch-style (Kaiming-uniform-ish) Linear(input_dim, 1) init,
    returned in PyTorch layout: weight [1, input_dim], bias [1, 1]."""
    kw, kb = jax.random.split(key)
    bound = 1.0 / jnp.sqrt(input_dim)
    w = jax.random.uniform(kw, (1, input_dim), jnp.float32, -bound, bound)
    b = jax.random.uniform(kb, (1, 1), jnp.float32, -bound, bound)
    return w, b


if __name__ == "__main__":
    key = jax.random.PRNGKey(0)
    kx, kp = jax.random.split(key)

    batch = 256          # small, but enough for a multi-step grid with block_b=128
    input_dim = 32       # module default
    x = jax.random.normal(kx, (batch, input_dim), jnp.float32)
    w, b = init_params(kp, input_dim)

    # Reference in plain JAX (same semantics as the PyTorch module).
    ref = jax.nn.sigmoid(x @ w.T + b)

    # Small tile -> grid of 2 steps (exercises the pipeline / parallel axis).
    out = jax.block_until_ready(feature_classifier_forward(x, w, b, block_b=128))
    assert out.shape == (batch, 1)
    assert jnp.allclose(out, ref, atol=1e-6, rtol=1e-6)

    # Default (large-tile) path + non-multiple-of-128 batch -> masked partial block.
    x_odd = x[:37]
    out_odd = jax.block_until_ready(feature_classifier_forward(x_odd, w, b))
    assert out_odd.shape == (37, 1)
    assert jnp.allclose(out_odd, ref[:37], atol=1e-6, rtol=1e-6)

    print("KERNEL_OK")
</pallas_src>

<mosaic_0001>
module attributes {stable_mosaic.version = 11 : i64} {
  func.func @_classifier_kernel(%arg0: i32, %arg1: memref<128x32xf32, #tpu.memory_space<vmem>>, %arg2: memref<1x32xf32, #tpu.memory_space<vmem>>, %arg3: memref<1x1xf32, #tpu.memory_space<vmem>>, %arg4: memref<1x128xf32, #tpu.memory_space<vmem>>) attributes {dimension_semantics = [#tpu.dimension_semantics<parallel>], iteration_bounds = array<i64: 2>, scalar_prefetch = 0 : i64, scratch_operands = 0 : i64, tpu.core_type = #tpu.core_type<tc>, window_params = [{transform_indices = @transform_0, window_bounds = array<i64: 128, 32>}, {pipeline_mode = #tpu.pipeline_mode<synchronous>, transform_indices = @transform_1, window_bounds = array<i64: 1, 32>}, {pipeline_mode = #tpu.pipeline_mode<synchronous>, transform_indices = @transform_2, window_bounds = array<i64: 1, 1>}, {transform_indices = @transform_3, window_bounds = array<i64: 1, 128>}]} {
    %c0 = arith.constant 0 : index
    %c0_0 = arith.constant 0 : index
    %0 = vector.load %arg1[%c0, %c0_0] : memref<128x32xf32, #tpu.memory_space<vmem>>, vector<128x32xf32>
    %c0_1 = arith.constant 0 : index
    %c0_2 = arith.constant 0 : index
    %1 = vector.load %arg2[%c0_1, %c0_2] : memref<1x32xf32, #tpu.memory_space<vmem>>, vector<1x32xf32>
    %cst = arith.constant dense<0.000000e+00> : vector<1x128xf32>
    %2 = tpu.matmul %1, %0, %cst {dimension_numbers = #tpu.dot_dimension_numbers<[1], [1], [0], [0], [0, 0, 1, 0], [], []>} : vector<1x32xf32>, vector<128x32xf32>, vector<1x128xf32> -> vector<1x128xf32>
    %c0_3 = arith.constant 0 : index
    %c0_4 = arith.constant 0 : index
    %3 = vector.load %arg3[%c0_3, %c0_4] : memref<1x1xf32, #tpu.memory_space<vmem>>, vector<1x1xf32>
    %4 = vector.broadcast %3 : vector<1x1xf32> to vector<1x128xf32>
    %5 = arith.addf %2, %4 : vector<1x128xf32>
    %6 = arith.negf %5 : vector<1x128xf32>
    %7 = math.exp %6 : vector<1x128xf32>
    %cst_5 = arith.constant 1.000000e+00 : f32
    %8 = vector.broadcast %cst_5 : f32 to vector<1x128xf32>
    %9 = arith.addf %8, %7 : vector<1x128xf32>
    %10 = arith.divf %8, %9 : vector<1x128xf32>
    %c0_6 = arith.constant 0 : index
    %c0_7 = arith.constant 0 : index
    %11 = vector.load %arg4[%c0_6, %c0_7] : memref<1x128xf32, #tpu.memory_space<vmem>>, vector<1x128xf32>
    tpu.vector_store %arg4[%c0_6, %c0_7], %10 {strides = array<i32>} : memref<1x128xf32, #tpu.memory_space<vmem>>, vector<1x128xf32>,
    return
  }
  func.func @transform_0(%arg0: i32) -> (i32, i32) {
    %c0_i32 = arith.constant 0 : i32
    %c0_i32_0 = arith.constant 0 : i32
    return %arg0, %c0_i32 : i32, i32
  }
  func.func @transform_1(%arg0: i32) -> (i32, i32) {
    %c0_i32 = arith.constant 0 : i32
    %c0_i32_0 = arith.constant 0 : i32
    %c0_i32_1 = arith.constant 0 : i32
    return %c0_i32, %c0_i32_0 : i32, i32
  }
  func.func @transform_2(%arg0: i32) -> (i32, i32) {
    %c0_i32 = arith.constant 0 : i32
    %c0_i32_0 = arith.constant 0 : i32
    %c0_i32_1 = arith.constant 0 : i32
    return %c0_i32, %c0_i32_0 : i32, i32
  }
  func.func @transform_3(%arg0: i32) -> (i32, i32) {
    %c0_i32 = arith.constant 0 : i32
    %c0_i32_0 = arith.constant 0 : i32
    return %c0_i32, %arg0 : i32, i32
  }
}

</mosaic_0001>

<bundles_post_ra>
// kernel: feature_classifier_forward.1
= control target key start
LH: loop header
LB: loop body
LE: loop exit
PB: predicated region body
PF: predicated region fallthrough
CT: control target
= control target key end

     0   :  { %s741_s0 = inlined_call_operand.vmem [shape: f32[256,32], index: 0, kind: input, shape index: {}]   ;;  %s742_s1 = inlined_call_operand.vmem [shape: f32[1,32], index: 1, kind: input, shape index: {}]   ;;  %s743_s2 = inlined_call_operand.<no memory space> [shape: f32[1,1], index: 2, kind: input, shape index: {}]   ;;  %s744_s3 = inlined_call_operand.hbm [shape: f32[1,256], index: 3, kind: output, shape index: {}]  }
   0x1   :  { %v8_v0 = vstv %s743_s2 }
   0x2   :  { %9 = vst [vmem:[#allocation2] sm:$0x1] %v8_v0 }
   0x3   :  { %10 = vsyncpa [#allocation4], 0 }
   0x4   :  { %12 = vsyncpa [#allocation4 + $0x1], 0  ;;  %s611_s14 = smov 0   ;;  %s613_s15 = smov 0  }
   0x5   :  { %s615_s16 = smov 0   ;;  %s617_s17 = smov 0  }
   0x6 LB: > { %s395_s2 = sadd.s32 4294967295, %s582_s17   ;;  %s396_s18 = sadd.s32 4294967294, %s582_s17   ;;  %s582_s17 = sphi %s617_s17, %s750_s17   ;;  %s578_s16 = sphi %s615_s16, %s749_s16   ;;  %s574_s15 = sphi %s613_s15, %s748_s15   ;;  %s570_s14 = sphi %s611_s14, %s747_s14  }
   0x7   : > { %s634_s19 = sadd.s32 1, %s582_s17   ;;  %s93_s20 = sadd.s32 1, %s578_s16 }
   0x8   : > { %s90_s21 = ssub.s32 %s582_s17, %s634_s19  ;;  %p103_p0 = scmp.ne.s32.totalorder %s578_s16, %s574_s15 }
   0x9   : > { %p91_p1 = scmp.eq.s32.totalorder %s90_s21, 0  ;;  %p104_p2 = scmp.eq.s32.totalorder %s395_s2, 1 }
   0xa   : > { %p109_p3 = scmp.ne.s32.totalorder %s574_s15, %s570_s14  ;;  %p110_p4 = scmp.eq.s32.totalorder %s396_s18, 1 }
   0xb   : > { %s644_s22 = scalar_select %p91_p1, %s578_s16, %s93_s20  }
   0xc   : > { %p646_p5 = por %p104_p2, %p103_p0  ;;  %p650_p6 = por %p110_p4, %p109_p3 }
   0xd   : > { %p399_p7 = scmp.ge.s32.totalorder %s582_s17, 1  ;;  %p143_p8 = scmp.lt.s32.totalorder %s582_s17, 3 }
   0xf   : > { %p144_p9 = pnand %p399_p7, %p143_p8 }
  0x10   : > { %s656_s25 = sshll.u32 (!%p144_p9), %s395_s2, 4  ;;  %s164_s6 = sand.u32 (!%p144_p9), 1, %s574_s15  }
  0x11   : > { %147 = sbr.rel (%p144_p9) target bundleno = 330 (0x14a), region = 32  ;;  %p167_p10 = scmp.lt.s32.totalorder (!%p144_p9), %s656_s25, 31 }
  0x12   : > { %s165_s7 = scalar_lea.vmem (!%p144_p9), [#allocation3], %s164_s6  ;;  %s706_s11 = scalar_lea.hbm (!%p144_p9), %s744_s3, %s656_s25 }
  0x13   : > { %s341_s8 = sshll.u32 (!%p144_p9), %s165_s7, 4  ;;  %s329_s12 = scalar_lea.sflag (!%p144_p9), [#allocation4], %s164_s6  ;;  %s342_s8 = int_to_ptr.vmem [resolvable:$true] %s341_s8 }
  0x14   : > { %s522_s13 = scalar_lea.vmem (!%p144_p9), %s342_s8, 16  ;;  %s587_s2 = smov (!%p144_p9), [#allocation3]  }
  0x15   : > { %p523_p11 = scmp.ne.s32.totalorder (!%p144_p9), %s342_s8, %s522_s13  ;;  %s526_s18 = sshll.u32 (!%p144_p9), %s587_s2, 4  ;;  %s527_s18 = int_to_ptr.vmem [resolvable:$false] %s526_s18 }
  0x16   : > { %v584_v1 = vmov 0.0   ;;  %vm585_vm0 = vmmov 0   ;;  %v189_v2 = vld [vmem:[#allocation2] sm:$0x1]  ;;  %v586_v3 = vmov 0   ;;  %s168_s26 = scalar_select %p167_p10, %s656_s25, 31  ;;  %v195_v21 = vlaneseq }
  0x17   : > { %440 = vmatprep.subr.mxu0 %v584_v1  ;;  %472 = vmatprep.mubr.msk.f32.mxu0 %vm585_vm0, %v584_v1  ;;  %vm199_vm1 = vcmask 261120   ;;  %v188_v20 = vld [vmem:[%s742_s1] sm:$0x1]  ;;  %p524_p12 = pnand %p523_p11, %p646_p5  ;;  %s528_s20 = scalar_lea.vmem %s527_s18, 32 }
  0x18   : > { %517 = vset.pattern.permute.xlu0 %v586_v3  ;;  %s401_s27 = sshll.u32 %s168_s26, 3  ;;  %v196_v22 = vshrl.u32 %v195_v21, 7  ;;  %p529_p0 = scmp.lt.s32.totalorder %s342_s8, %s527_s18 }
  0x19   : > { %192 = vperm.xlu0 %517, %v189_v2   ;;  %s663_s30 = scalar_lea.vmem %s741_s0, %s401_s27  ;;  %p525_p13 = pneg %p524_p12 }
  0x1a   : > { %v187_v4 = vld [vmem:[%s663_s30 + $0x78] sm:$0xff]  ;;  %v186_v5 = vld [vmem:[%s663_s30 + $0x70] sm:$0xff]  ;;  %v185_v6 = vld [vmem:[%s663_s30 + $0x68] sm:$0xff]  ;;  %v197_v23 = vsub.s32 0, %v196_v22  ;;  %p530_p1 = scmp.lt.s32.totalorder %s528_s20, %s522_s13 }
  0x1b   : > { %441 = vmatpush3.xpose.msk.msra.mxu0 %vm199_vm1, %v187_v4  ;;  %v184_v7 = vld [vmem:[%s663_s30 + $0x60] sm:$0xff]  ;;  %v183_v8 = vld [vmem:[%s663_s30 + $0x58] sm:$0xff]  ;;  %v182_v9 = vld [vmem:[%s663_s30 + $0x50] sm:$0xff] }
  0x1c   : > { %442 = vmatprep.subr.mxu0 %v584_v1  ;;  %v181_v10 = vld [vmem:[%s663_s30 + $0x48] sm:$0xff]  ;;  %v180_v11 = vld [vmem:[%s663_s30 + $0x40] sm:$0xff]  ;;  %v179_v12 = vld [vmem:[%s663_s30 + $0x38] sm:$0xff]  ;;  %p531_p2 = por %p530_p1, %p529_p0 }
  0x1d   : > { %v178_v13 = vld [vmem:[%s663_s30 + $0x30] sm:$0xff]  ;;  %v177_v14 = vld [vmem:[%s663_s30 + $0x28] sm:$0xff]  ;;  %v176_v15 = vld [vmem:[%s663_s30 + $0x20] sm:$0xff] }
  0x1e   : > { %v175_v16 = vld [vmem:[%s663_s30 + $0x18] sm:$0xff]  ;;  %v174_v17 = vld [vmem:[%s663_s30 + $0x10] sm:$0xff]  ;;  %v173_v18 = vld [vmem:[%s663_s30 + $0x8] sm:$0xff]  ;;  %p532_p3 = pnand %p531_p2, %p525_p13 }
  0x1f   : > { %443 = vmatpush3.xpose.msk.msra.mxu0 %vm199_vm1, %v186_v5  ;;  %v172_v19 = vld [vmem:[%s663_s30] sm:$0xff] }
  0x20   : > { %444 = vmatprep.subr.mxu0 %v584_v1 }
  0x23   : > { %445 = vmatpush3.xpose.msk.msra.mxu0 %vm199_vm1, %v185_v6 }
  0x24   : > { %446 = vmatprep.subr.mxu0 %v584_v1 }
  0x27   : > { %447 = vmatpush3.xpose.msk.msra.mxu0 %vm199_vm1, %v184_v7 }
  0x28   : > { %448 = vmatprep.subr.mxu0 %v584_v1 }
  0x2b   : > { %449 = vmatpush3.xpose.msk.msra.mxu0 %vm199_vm1, %v183_v8 }
  0x2c   : > { %450 = vmatprep.subr.mxu0 %v584_v1 }
  0x2f   : > { %451 = vmatpush3.xpose.msk.msra.mxu0 %vm199_vm1, %v182_v9 }
  0x30   : > { %452 = vmatprep.subr.mxu0 %v584_v1 }
  0x33   : > { %453 = vmatpush3.xpose.msk.msra.mxu0 %vm199_vm1, %v181_v10 }
  0x34   : > { %454 = vmatprep.subr.mxu0 %v584_v1 }
  0x37   : > { %455 = vmatpush3.xpose.msk.msra.mxu0 %vm199_vm1, %v180_v11 }
  0x38   : > { %456 = vmatprep.subr.mxu0 %v584_v1 }
  0x3b   : > { %457 = vmatpush3.xpose.msk.msra.mxu0 %vm199_vm1, %v179_v12 }
  0x3c   : > { %458 = vmatprep.subr.mxu0 %v584_v1 }
  0x3f   : > { %459 = vmatpush3.xpose.msk.msra.mxu0 %vm199_vm1, %v178_v13 }
  0x40   : > { %460 = vmatprep.subr.mxu0 %v584_v1 }
  0x43   : > { %461 = vmatpush3.xpose.msk.msra.mxu0 %vm199_vm1, %v177_v14 }
  0x44   : > { %462 = vmatprep.subr.mxu0 %v584_v1 }
  0x47   : > { %463 = vmatpush3.xpose.msk.msra.mxu0 %vm199_vm1, %v176_v15 }
  0x48   : > { %464 = vmatprep.subr.mxu0 %v584_v1 }
  0x4b   : > { %465 = vmatpush3.xpose.msk.msra.mxu0 %vm199_vm1, %v175_v16 }
  0x4c   : > { %466 = vmatprep.subr.mxu0 %v584_v1 }
  0x4f   : > { %467 = vmatpush3.xpose.msk.msra.mxu0 %vm199_vm1, %v174_v17 }
  0x50   : > { %468 = vmatprep.subr.mxu0 %v584_v1 }
  0x53   : > { %469 = vmatpush3.xpose.msk.msra.mxu0 %vm199_vm1, %v173_v18 }
  0x54   : > { %470 = vmatprep.subr.mxu0 %v584_v1 }
  0x57   : > { %471 = vmatpush3.xpose.msk.msra.mxu0 %vm199_vm1, %v172_v19 }
  0x5a   : > { %473 = vmatmul.mubr.msk.f32.vlgmr.msra.gmra.mxu0 %vm199_vm1, %v188_v20 }
  0x94   : > { %v193_v24 = vpop.permute.xlu0 %192 }
  0x95   : > { %v198_v25 = vrot.slane %v193_v24, %v197_v23 }
 0x11a   : > { %v317_v26 = vpop.f32.mrf.mxu0 }
 0x11b   : > { %v318_v27 = vadd.f32 %v317_v26, %v198_v25 }
 0x11c   : > { %v474_v28 = vpop.f32.mrf.mxu0 }
 0x11d   : > { %v419_v29 = vmul.f32 -1.442695, %v318_v27 }
 0x11f   : > { %518 = vpow2.f32 %v419_v29 }
 0x12c   : > { %v519_v30 = vpop.eup %518 }
 0x12d   : > { %v324_v31 = vadd.f32 1.0, %v519_v30 }
 0x12f   : > { %520 = vrcp.f32 %v324_v31 }
 0x13c   : > { %v521_v32 = vpop.eup %520 }
 0x13d   : > { %327 = vst [vmem:[%s165_s7] sm:$0x1] %v521_v32 }
 0x13e   : > { %535 = shalt.err (!%p532_p3)
}
 0x13f   : > { %s536_s21 = scalar_lea.hbm %s706_s11, 16  ;;  %s540_s27 = scalar_lea.hbm %s744_s3, 32 }
 0x140   : > { %p537_p4 = scmp.ne.s32.totalorder %s706_s11, %s536_s21  ;;  %p541_p9 = scmp.lt.s32.totalorder %s706_s11, %s744_s3 }
 0x141   : > { %p542_p10 = scmp.lt.s32.totalorder %s540_s27, %s536_s21 }
 0x142   : > { %p538_p7 = pnand %p537_p4, %p646_p5 }
 0x143   : > { %p543_p11 = por %p542_p10, %p541_p9 }
 0x144   : > { %p539_p8 = pneg %p538_p7 }
 0x146   : > { %p544_p12 = pnand %p543_p11, %p539_p8 }
 0x148   : > { %547 = shalt.err (!%p544_p12)
}
 0x149   : > { %475 = dma.vmem_to_hbm [thread:$0]  (%p646_p5), %s342_s8, 16, %s706_s11, %s329_s12  }
 0x14a PF: > { %p481_p13 = scmp.ge.s32.totalorder %s582_s17, 2  ;;  %s353_s30 = sand.u32 1, %s570_s14  }
 0x14b   : > { %s354_s4 = scalar_lea.sflag [#allocation4], %s353_s30 }
 0x14c   : > { %p478_p0 = pnand %p481_p13, %p650_p6 }
 0x14e   : > { %p479_p1 = pneg %p478_p0 }
 0x150   : > { %565 = dma.done.wait (%p479_p1), %s354_s4, 16  }
 0x151   : > { %567 = vsyncadd (%p479_p1), %s354_s4, 4294967280  ;;  %p15_p2 = scmp.ge.s32.totalorder %s634_s19, 4   ;;  %s747_s14 = smov %s574_s15 }
 0x152   : > { %s748_s15 = smov %s578_s16  ;;  %s749_s16 = smov %s644_s22 }
 0x153   : > { %s750_s17 = smov %s634_s19  ;;  %17 = sbr.rel (!%p15_p2) target bundleno = 6 (0x6), region = 67 }
 0x158   :  { %358 = vsyncpa [#allocation4], 1 }
 0x159   :  { %360 = vsyncpa [#allocation4 + $0x1], 1 }

</bundles_post_ra>
